<compile_context>
chip_gen: v5e
topology: v5e:2x2
jax: 0.10.0
libtpu: 0.0.40
codegen_flags: <defaults>
</compile_context>

<pallas_src>
import jax
import jax.numpy as jnp
from jax.experimental import pallas as pl
from jax.experimental.pallas import tpu as pltpu


def _critic_kernel(sa_ref, w1_ref, w2_ref, w3_ref, b12_ref, b3_ref, q_ref):
    H = w2_ref.shape[1]
    cdt = w2_ref.dtype                      # compute dtype of the matmul operands

    b1 = b12_ref[0:1, :]                    # [1, 2H] f32
    b2 = b12_ref[1:2, :]                    # [1, 2H] f32

    # Layer 1: one fused MXU dot (K = S+A shared by both heads, all 2H columns useful).
    h = jnp.dot(sa_ref[...], w1_ref[...], preferred_element_type=jnp.float32)
    h = jnp.maximum(h + b1, 0.0).astype(cdt)            # [tm, 2H]

    # Layer 2: per-head [H, H] dots (no block-diagonal FLOP / VMEM waste).
    h1 = jnp.dot(h[:, :H], w2_ref[0], preferred_element_type=jnp.float32)
    h2 = jnp.dot(h[:, H:], w2_ref[1], preferred_element_type=jnp.float32)
    h1 = jnp.maximum(h1 + b2[:, :H], 0.0).astype(cdt)    # [tm, H]
    h2 = jnp.maximum(h2 + b2[:, H:], 0.0).astype(cdt)    # [tm, H]

    # Layer 3: two tiny [H, 1] dots; single [tm, 2] store (col 0 = q1, col 1 = q2).
    q1 = jnp.dot(h1, w3_ref[0], preferred_element_type=jnp.float32)
    q2 = jnp.dot(h2, w3_ref[1], preferred_element_type=jnp.float32)
    q_ref[...] = jnp.concatenate([q1, q2], axis=1) + b3_ref[...]


def pack_critic_params(params, *, compute_dtype=jnp.bfloat16):
    """One-time fusion of the twin-head parameters into the packed layout.

    Weights are cast to `compute_dtype` (bf16 by default) once, here; biases
    stay f32 (added after the f32 accumulation).
    """
    f32 = jnp.float32
    w1 = jnp.concatenate([params["q1_w1"], params["q2_w1"]], axis=1)          # [S+A, 2H]
    w2 = jnp.stack([params["q1_w2"], params["q2_w2"]], axis=0)                # [2, H, H]
    w3 = jnp.stack([params["q1_w3"], params["q2_w3"]], axis=0)                # [2, H, 1]
    b12 = jnp.concatenate(
        [jnp.concatenate([params["q1_b1"], params["q2_b1"]], axis=1),
         jnp.concatenate([params["q1_b2"], params["q2_b2"]], axis=1)],
        axis=0)                                                               # [2, 2H]
    b3 = jnp.concatenate([params["q1_b3"], params["q2_b3"]], axis=1)          # [1, 2]
    return {
        "w1": w1.astype(compute_dtype),
        "w2": w2.astype(compute_dtype),
        "w3": w3.astype(compute_dtype),
        "b12": b12.astype(f32),
        "b3": b3.astype(f32),
    }


def critic_forward(state, action, packed, *, block_rows=2048):
    """Twin-Q critic forward on packed params. Returns (q1, q2), each [B, 1] f32."""
    compute_dtype = packed["w1"].dtype
    # Single pre-concatenated input (same op as torch.cat in the reference),
    # cast once to the matmul compute dtype.
    sa = jnp.concatenate([state, action], axis=1).astype(compute_dtype)       # [B, S+A]
    B, SA = sa.shape
    H = packed["w2"].shape[1]

    # Row-tile selection: biggest tile up to block_rows; for large batches keep
    # >= 2 grid steps so the "parallel" axis shards across both v7x TensorCores.
    tm = min(B, block_rows)
    if B >= 256 and pl.cdiv(B, tm) < 2:
        tm = pl.cdiv(B, 2)
    if tm < B:
        tm = min(((tm + 7) // 8) * 8, B)   # keep sublane (8) alignment for partial tiles
    grid = (pl.cdiv(B, tm),)
    # Note: when B % tm != 0 the padded tail rows of the input tile may hold
    # stale VMEM; their outputs are discarded by Pallas (no cross-row reductions
    # are performed in-kernel, so results stay correct).

    # Live-VMEM estimate; only set an explicit limit when it matters (v7x: 64 MiB
    # physical / 32 MiB default scoped vs 128 MiB on v5e/v6e).
    itemsize = jnp.dtype(compute_dtype).itemsize
    w_bytes = sum(int(packed[k].size) * packed[k].dtype.itemsize
                  for k in ("w1", "w2", "w3", "b12", "b3"))
    est = (2 * tm * SA * itemsize      # double-buffered input tile
           + 2 * tm * 2 * 4            # double-buffered output tile
           + 2 * w_bytes               # resident weights (default double-buffered)
           + 4 * tm * 2 * H * 4)       # intermediates (generous f32 bound)
    vmem_limit = None
    if est > 24 * 1024 * 1024:
        vmem_limit = int(min(max(2 * est, 32 * 1024 * 1024), 64 * 1024 * 1024))

    def row_spec(cols):
        return pl.BlockSpec((tm, cols), lambda i: (i, 0))

    def resident_spec(arr):
        zeros = (0,) * arr.ndim
        return pl.BlockSpec(arr.shape, lambda i, zeros=zeros: zeros)

    q = pl.pallas_call(
        _critic_kernel,
        out_shape=jax.ShapeDtypeStruct((B, 2), jnp.float32),
        grid=grid,
        in_specs=[
            row_spec(SA),                    # (state || action) rows
            resident_spec(packed["w1"]),     # weights stay resident across the grid
            resident_spec(packed["w2"]),
            resident_spec(packed["w3"]),
            resident_spec(packed["b12"]),
            resident_spec(packed["b3"]),
        ],
        out_specs=row_spec(2),
        compiler_params=pltpu.CompilerParams(
            dimension_semantics=("parallel",),
            vmem_limit_bytes=vmem_limit,
        ),
    )(sa, packed["w1"], packed["w2"], packed["w3"], packed["b12"], packed["b3"])

    return q[:, 0:1], q[:, 1:2]


def init_critic_params(key, state_dim, action_dim, hidden_dim):
    """Deterministic init mimicking nn.Linear default (U[-1/sqrt(fan_in), +...])."""
    in_dim = state_dim + action_dim

    def linear(k, fan_in, fan_out):
        kw, kb = jax.random.split(k)
        bound = 1.0 / jnp.sqrt(float(fan_in))
        w = jax.random.uniform(kw, (fan_in, fan_out), jnp.float32, -bound, bound)
        b = jax.random.uniform(kb, (1, fan_out), jnp.float32, -bound, bound)
        return w, b

    keys = jax.random.split(key, 6)
    p = {}
    p["q1_w1"], p["q1_b1"] = linear(keys[0], in_dim, hidden_dim)
    p["q1_w2"], p["q1_b2"] = linear(keys[1], hidden_dim, hidden_dim)
    p["q1_w3"], p["q1_b3"] = linear(keys[2], hidden_dim, 1)
    p["q2_w1"], p["q2_b1"] = linear(keys[3], in_dim, hidden_dim)
    p["q2_w2"], p["q2_b2"] = linear(keys[4], hidden_dim, hidden_dim)
    p["q2_w3"], p["q2_b3"] = linear(keys[5], hidden_dim, 1)
    return p


def critic_reference(state, action, params):
    """Pure-JAX f32 reference mirroring the PyTorch forward (unfused params)."""
    sa = jnp.concatenate([state, action], axis=1)
    h1 = jax.nn.relu(sa @ params["q1_w1"] + params["q1_b1"])
    h1 = jax.nn.relu(h1 @ params["q1_w2"] + params["q1_b2"])
    q1 = h1 @ params["q1_w3"] + params["q1_b3"]
    h2 = jax.nn.relu(sa @ params["q2_w1"] + params["q2_b1"])
    h2 = jax.nn.relu(h2 @ params["q2_w2"] + params["q2_b2"])
    q2 = h2 @ params["q2_w3"] + params["q2_b3"]
    return q1, q2


def critic_reference_bf16(state, action, params):
    """Reference with the same bf16-operand / f32-accumulation cast points as the kernel."""
    bf, f32 = jnp.bfloat16, jnp.float32
    sa = jnp.concatenate([state, action], axis=1).astype(bf)

    def head(w1, b1, w2, b2, w3, b3):
        h = jnp.dot(sa, w1.astype(bf), preferred_element_type=f32)
        h = jax.nn.relu(h + b1).astype(bf)
        h = jnp.dot(h, w2.astype(bf), preferred_element_type=f32)
        h = jax.nn.relu(h + b2).astype(bf)
        return jnp.dot(h, w3.astype(bf), preferred_element_type=f32) + b3

    q1 = head(params["q1_w1"], params["q1_b1"], params["q1_w2"],
              params["q1_b2"], params["q1_w3"], params["q1_b3"])
    q2 = head(params["q2_w1"], params["q2_b1"], params["q2_w2"],
              params["q2_b2"], params["q2_w3"], params["q2_b3"])
    return q1, q2


if __name__ == "__main__":
    B, STATE_DIM, ACTION_DIM, HIDDEN = 8, 24, 8, 32

    key = jax.random.PRNGKey(0)
    k_params, k_state, k_action = jax.random.split(key, 3)

    params = init_critic_params(k_params, STATE_DIM, ACTION_DIM, HIDDEN)
    packed = pack_critic_params(params)   # bf16 operand weights, f32 biases

    state = jax.random.normal(k_state, (B, STATE_DIM), jnp.float32)
    action = jax.random.normal(k_action, (B, ACTION_DIM), jnp.float32)

    q1, q2 = critic_forward(state, action, packed)
    q1 = jax.block_until_ready(q1)
    q2 = jax.block_until_ready(q2)
    assert q1.shape == (B, 1) and q2.shape == (B, 1)

    # Tight check vs. a reference using identical bf16 cast points.
    q1_bf, q2_bf = critic_reference_bf16(state, action, params)
    assert jnp.allclose(q1, q1_bf, atol=1e-3, rtol=1e-3)
    assert jnp.allclose(q2, q2_bf, atol=1e-3, rtol=1e-3)

    # Loose check vs. the pure-f32 PyTorch-equivalent reference (bf16 operand precision).
    q1_f32, q2_f32 = critic_reference(state, action, params)
    assert jnp.allclose(q1, q1_f32, atol=5e-2, rtol=5e-2)
    assert jnp.allclose(q2, q2_f32, atol=5e-2, rtol=5e-2)

    print("KERNEL_OK")
</pallas_src>

<mosaic_0001>
module attributes {stable_mosaic.version = 11 : i64} {
  func.func @_critic_kernel(%arg0: i32, %arg1: memref<8x32xbf16, #tpu.memory_space<vmem>>, %arg2: memref<32x64xbf16, #tpu.memory_space<vmem>>, %arg3: memref<2x32x32xbf16, #tpu.memory_space<vmem>>, %arg4: memref<2x32x1xbf16, #tpu.memory_space<vmem>>, %arg5: memref<2x64xf32, #tpu.memory_space<vmem>>, %arg6: memref<1x2xf32, #tpu.memory_space<vmem>>, %arg7: memref<8x2xf32, #tpu.memory_space<vmem>>) attributes {dimension_semantics = [#tpu.dimension_semantics<parallel>], iteration_bounds = array<i64: 1>, scalar_prefetch = 0 : i64, scratch_operands = 0 : i64, tpu.core_type = #tpu.core_type<tc>, window_params = [{transform_indices = @transform_0, window_bounds = array<i64: 8, 32>}, {pipeline_mode = #tpu.pipeline_mode<synchronous>, transform_indices = @transform_1, window_bounds = array<i64: 32, 64>}, {pipeline_mode = #tpu.pipeline_mode<synchronous>, transform_indices = @transform_2, window_bounds = array<i64: 2, 32, 32>}, {pipeline_mode = #tpu.pipeline_mode<synchronous>, transform_indices = @transform_3, window_bounds = array<i64: 2, 32, 1>}, {pipeline_mode = #tpu.pipeline_mode<synchronous>, transform_indices = @transform_4, window_bounds = array<i64: 2, 64>}, {pipeline_mode = #tpu.pipeline_mode<synchronous>, transform_indices = @transform_5, window_bounds = array<i64: 1, 2>}, {transform_indices = @transform_6, window_bounds = array<i64: 8, 2>}]} {
    %c0 = arith.constant 0 : index
    %c0_0 = arith.constant 0 : index
    %0 = vector.load %arg5[%c0, %c0_0] : memref<2x64xf32, #tpu.memory_space<vmem>>, vector<1x64xf32>
    %c1 = arith.constant 1 : index
    %c0_1 = arith.constant 0 : index
    %1 = vector.load %arg5[%c1, %c0_1] : memref<2x64xf32, #tpu.memory_space<vmem>>, vector<1x64xf32>
    %c0_2 = arith.constant 0 : index
    %c0_3 = arith.constant 0 : index
    %2 = vector.load %arg1[%c0_2, %c0_3] : memref<8x32xbf16, #tpu.memory_space<vmem>>, vector<8x32xbf16>
    %c0_4 = arith.constant 0 : index
    %c0_5 = arith.constant 0 : index
    %3 = vector.load %arg2[%c0_4, %c0_5] : memref<32x64xbf16, #tpu.memory_space<vmem>>, vector<32x64xbf16>
    %cst = arith.constant dense<0.000000e+00> : vector<8x64xf32>
    %4 = tpu.matmul %2, %3, %cst {dimension_numbers = #tpu.dot_dimension_numbers<[1], [0], [0], [1], [0, 0, 1, 1], [], []>} : vector<8x32xbf16>, vector<32x64xbf16>, vector<8x64xf32> -> vector<8x64xf32>
    %5 = vector.broadcast %0 : vector<1x64xf32> to vector<8x64xf32>
    %6 = arith.addf %4, %5 : vector<8x64xf32>
    %cst_6 = arith.constant 0.000000e+00 : f32
    %7 = vector.broadcast %cst_6 : f32 to vector<8x64xf32>
    %8 = arith.maximumf %6, %7 : vector<8x64xf32>
    %9 = arith.truncf %8 : vector<8x64xf32> to vector<8x64xbf16>
    %10 = vector.extract_strided_slice %9 {offsets = [0, 0], sizes = [8, 32], strides = [1, 1]} : vector<8x64xbf16> to vector<8x32xbf16>
    %c0_7 = arith.constant 0 : index
    %c0_8 = arith.constant 0 : index
    %c0_9 = arith.constant 0 : index
    %11 = vector.load %arg3[%c0_7, %c0_8, %c0_9] : memref<2x32x32xbf16, #tpu.memory_space<vmem>>, vector<1x32x32xbf16>
    %12 = vector.shape_cast %11 : vector<1x32x32xbf16> to vector<32x32xbf16>
    %cst_10 = arith.constant dense<0.000000e+00> : vector<8x32xf32>
    %13 = tpu.matmul %10, %12, %cst_10 {dimension_numbers = #tpu.dot_dimension_numbers<[1], [0], [0], [1], [0, 0, 1, 1], [], []>} : vector<8x32xbf16>, vector<32x32xbf16>, vector<8x32xf32> -> vector<8x32xf32>
    %14 = vector.extract_strided_slice %9 {offsets = [0, 32], sizes = [8, 32], strides = [1, 1]} : vector<8x64xbf16> to vector<8x32xbf16>
    %c1_11 = arith.constant 1 : index
    %c0_12 = arith.constant 0 : index
    %c0_13 = arith.constant 0 : index
    %15 = vector.load %arg3[%c1_11, %c0_12, %c0_13] : memref<2x32x32xbf16, #tpu.memory_space<vmem>>, vector<1x32x32xbf16>
    %16 = vector.shape_cast %15 : vector<1x32x32xbf16> to vector<32x32xbf16>
    %cst_14 = arith.constant dense<0.000000e+00> : vector<8x32xf32>
    %17 = tpu.matmul %14, %16, %cst_14 {dimension_numbers = #tpu.dot_dimension_numbers<[1], [0], [0], [1], [0, 0, 1, 1], [], []>} : vector<8x32xbf16>, vector<32x32xbf16>, vector<8x32xf32> -> vector<8x32xf32>
    %18 = vector.extract_strided_slice %1 {offsets = [0, 0], sizes = [1, 32], strides = [1, 1]} : vector<1x64xf32> to vector<1x32xf32>
    %19 = vector.broadcast %18 : vector<1x32xf32> to vector<8x32xf32>
    %20 = arith.addf %13, %19 : vector<8x32xf32>
    %cst_15 = arith.constant 0.000000e+00 : f32
    %21 = vector.broadcast %cst_15 : f32 to vector<8x32xf32>
    %22 = arith.maximumf %20, %21 : vector<8x32xf32>
    %23 = arith.truncf %22 : vector<8x32xf32> to vector<8x32xbf16>
    %24 = vector.extract_strided_slice %1 {offsets = [0, 32], sizes = [1, 32], strides = [1, 1]} : vector<1x64xf32> to vector<1x32xf32>
    %25 = vector.broadcast %24 : vector<1x32xf32> to vector<8x32xf32>
    %26 = arith.addf %17, %25 : vector<8x32xf32>
    %cst_16 = arith.constant 0.000000e+00 : f32
    %27 = vector.broadcast %cst_16 : f32 to vector<8x32xf32>
    %28 = arith.maximumf %26, %27 : vector<8x32xf32>
    %29 = arith.truncf %28 : vector<8x32xf32> to vector<8x32xbf16>
    %c0_17 = arith.constant 0 : index
    %c0_18 = arith.constant 0 : index
    %c0_19 = arith.constant 0 : index
    %30 = vector.load %arg4[%c0_17, %c0_18, %c0_19] : memref<2x32x1xbf16, #tpu.memory_space<vmem>>, vector<1x32x1xbf16>
    %31 = vector.shape_cast %30 : vector<1x32x1xbf16> to vector<32x1xbf16>
    %cst_20 = arith.constant dense<0.000000e+00> : vector<8x1xf32>
    %32 = tpu.matmul %23, %31, %cst_20 {dimension_numbers = #tpu.dot_dimension_numbers<[1], [0], [0], [1], [0, 0, 1, 1], [], []>} : vector<8x32xbf16>, vector<32x1xbf16>, vector<8x1xf32> -> vector<8x1xf32>
    %c1_21 = arith.constant 1 : index
    %c0_22 = arith.constant 0 : index
    %c0_23 = arith.constant 0 : index
    %33 = vector.load %arg4[%c1_21, %c0_22, %c0_23] : memref<2x32x1xbf16, #tpu.memory_space<vmem>>, vector<1x32x1xbf16>
    %34 = vector.shape_cast %33 : vector<1x32x1xbf16> to vector<32x1xbf16>
    %cst_24 = arith.constant dense<0.000000e+00> : vector<8x1xf32>
    %35 = tpu.matmul %29, %34, %cst_24 {dimension_numbers = #tpu.dot_dimension_numbers<[1], [0], [0], [1], [0, 0, 1, 1], [], []>} : vector<8x32xbf16>, vector<32x1xbf16>, vector<8x1xf32> -> vector<8x1xf32>
    %36 = tpu.concatenate %32, %35 in 1 : vector<8x1xf32>, vector<8x1xf32> -> vector<8x2xf32>
    %c0_25 = arith.constant 0 : index
    %c0_26 = arith.constant 0 : index
    %37 = vector.load %arg6[%c0_25, %c0_26] : memref<1x2xf32, #tpu.memory_space<vmem>>, vector<1x2xf32>
    %38 = vector.broadcast %37 : vector<1x2xf32> to vector<8x2xf32>
    %39 = arith.addf %36, %38 : vector<8x2xf32>
    %c0_27 = arith.constant 0 : index
    %c0_28 = arith.constant 0 : index
    %40 = vector.load %arg7[%c0_27, %c0_28] : memref<8x2xf32, #tpu.memory_space<vmem>>, vector<8x2xf32>
    tpu.vector_store %arg7[%c0_27, %c0_28], %39 {strides = array<i32>} : memref<8x2xf32, #tpu.memory_space<vmem>>, vector<8x2xf32>,
    return
  }
  func.func @transform_0(%arg0: i32) -> (i32, i32) {
    %c0_i32 = arith.constant 0 : i32
    %c0_i32_0 = arith.constant 0 : i32
    return %arg0, %c0_i32 : i32, i32
  }
  func.func @transform_1(%arg0: i32) -> (i32, i32) {
    %c0_i32 = arith.constant 0 : i32
    %c0_i32_0 = arith.constant 0 : i32
    %c0_i32_1 = arith.constant 0 : i32
    return %c0_i32, %c0_i32_0 : i32, i32
  }
  func.func @transform_2(%arg0: i32) -> (i32, i32, i32) {
    %c0_i32 = arith.constant 0 : i32
    %c0_i32_0 = arith.constant 0 : i32
    %c0_i32_1 = arith.constant 0 : i32
    %c0_i32_2 = arith.constant 0 : i32
    return %c0_i32, %c0_i32_0, %c0_i32_1 : i32, i32, i32
  }
  func.func @transform_3(%arg0: i32) -> (i32, i32, i32) {
    %c0_i32 = arith.constant 0 : i32
    %c0_i32_0 = arith.constant 0 : i32
    %c0_i32_1 = arith.constant 0 : i32
    %c0_i32_2 = arith.constant 0 : i32
    return %c0_i32, %c0_i32_0, %c0_i32_1 : i32, i32, i32
  }
  func.func @transform_4(%arg0: i32) -> (i32, i32) {
    %c0_i32 = arith.constant 0 : i32
    %c0_i32_0 = arith.constant 0 : i32
    %c0_i32_1 = arith.constant 0 : i32
    return %c0_i32, %c0_i32_0 : i32, i32
  }
  func.func @transform_5(%arg0: i32) -> (i32, i32) {
    %c0_i32 = arith.constant 0 : i32
    %c0_i32_0 = arith.constant 0 : i32
    %c0_i32_1 = arith.constant 0 : i32
    return %c0_i32, %c0_i32_0 : i32, i32
  }
  func.func @transform_6(%arg0: i32) -> (i32, i32) {
    %c0_i32 = arith.constant 0 : i32
    %c0_i32_0 = arith.constant 0 : i32
    return %arg0, %c0_i32 : i32, i32
  }
}

</mosaic_0001>

<bundles_post_ra>
// kernel: tpu_custom_call.1
= control target key start
LH: loop header
LB: loop body
LE: loop exit
PB: predicated region body
PF: predicated region fallthrough
CT: control target
= control target key end

     0   :  { %11 = vsyncpa [#allocation3], 0  ;;  %s468_s0 = inlined_call_operand.hbm [shape: bf16[8,32], index: 0, kind: input, shape index: {}]   ;;  %s469_s1 = inlined_call_operand.hbm [shape: bf16[32,64], index: 1, kind: input, shape index: {}]   ;;  %s470_s2 = inlined_call_operand.vmem [shape: bf16[2,32,32], index: 2, kind: input, shape index: {}]   ;;  %s471_s3 = inlined_call_operand.vmem [shape: bf16[2,32,1], index: 3, kind: input, shape index: {}]   ;;  %s472_s4 = inlined_call_operand.vmem [shape: f32[2,64], index: 4, kind: input, shape index: {}]   ;;  %s473_s5 = inlined_call_operand.vmem [shape: f32[1,2], index: 5, kind: input, shape index: {}]   ;;  %s474_s6 = inlined_call_operand.vmem [shape: f32[8,2], index: 6, kind: output, shape index: {}]  }
   0x1   :  { %s18_s23 = sshll.u32 %s468_s0, 4  ;;  %s19_s23 = int_to_ptr.hbm [resolvable:$true] %s18_s23 }
   0x2   :  { %12 = vsyncpa [#allocation5], 0  ;;  %s380_s24 = smov [#allocation2]   ;;  %s28_s28 = sshll.u32 %s469_s1, 4  ;;  %s29_s28 = int_to_ptr.hbm [resolvable:$true] %s28_s28 }
   0x3   :  { %s20_s25 = sshll.u32 %s380_s24, 4  ;;  %s381_s29 = smov [#allocation4]   ;;  %s21_s25 = int_to_ptr.vmem [resolvable:$true] %s20_s25 }
   0x4   :  { %23 = dma.hbm_to_vmem [thread:$0]  %s19_s23, 64, %s21_s25, [#allocation3]  }
   0x5   :  { %s30_s30 = sshll.u32 %s381_s29, 4  ;;  %s382_s7 = smov 64   ;;  %s31_s30 = int_to_ptr.vmem [resolvable:$true] %s30_s30 }
   0x6   :  { %s383_s8 = smov 4  }
   0x7   :  { %36 = dma.hbm_to_vmem [thread:$0]  %s29_s28, 256, %s31_s30, [#allocation5], %s382_s7, %s382_s7, %s383_s8  }
   0x8   :  { %376 = dma.done.wait [#allocation3], 64  }
   0x9   :  { %377 = vsyncadd [#allocation3], 4294967232 }
   0xa   :  { %378 = dma.done.wait [#allocation5], 256  }
   0xb   :  { %379 = vsyncadd [#allocation5], 4294967040  ;;  %v310_v0 = vld [vmem:[#allocation4 + $0x8] sm:$0xff]  ;;  %v309_v1 = vld [vmem:[#allocation4] sm:$0xff]  ;;  %vm74_vm0 = vcmask 261120   ;;  %s384_s17 = smov 96  }
   0xc   :  { %84 = vmatpush.bf16.msra.mxu0 %v310_v0  ;;  %v56_v2 = vld [vmem:[#allocation2] sm:$0xf]  ;;  %v312_v3 = vld [vmem:[%s470_s2 + $0x8] sm:$0xff]  ;;  %v314_v5 = vld [vmem:[%s470_s2 + $0x18] sm:$0xff]  ;;  %vm241_vm1 = vcmask 7168   ;;  %vm248_vm2 = vcmask 15360  }
   0xd   :  { %124 = vmatpush.bf16.msra.mxu1 %v312_v3  ;;  %v311_v4 = vld [vmem:[%s470_s2] sm:$0xff]  ;;  %163 = vmatpush.bf16.msra.mxu2 %v314_v5  ;;  %v313_v6 = vld [vmem:[%s470_s2 + $0x10] sm:$0xff]  ;;  %v316_v16 = vld [vmem:[%s471_s3 + $0x8] sm:$0xff] }
   0xe   :  { %v325_v7 = vld [vmem:[%s472_s4] ss:$0 sm:$0xff]  ;;  %v326_v15 = vld [vmem:[%s472_s4 + $0x1] ss:$0 sm:$0xff]  ;;  %197 = vmatpush.bf16.msra.mxu3 %v316_v16  ;;  %v318_v18 = vld [vmem:[%s471_s3 + $0x18] sm:$0xff] }
   0xf   :  { %v315_v17 = vld [vmem:[%s471_s3] sm:$0xff]  ;;  %v317_v19 = vld [vmem:[%s471_s3 + $0x10] sm:$0xff]  ;;  %s385_s3 = smov 1  }
  0x10   :  { %85 = vmatpush.bf16.msra.mxu0 %v309_v1  ;;  %v327_v36 = vld [vmem:[%s473_s5] ss:$0 sm:$0xff] }
  0x11   :  { %125 = vmatpush.bf16.msra.mxu1 %v311_v4  ;;  %164 = vmatpush.bf16.msra.mxu2 %v313_v6 }
  0x12   :  { %198 = vmatpush.bf16.msra.mxu3 %v315_v17 }
  0x13   :  { %264 = vmatmul.msk.bf16.vlgmr.msra.gmra.mxu0 %vm74_vm0, %v56_v2 }
  0x14   :  { %230 = vmatpush.bf16.msrb.mxu0 %v318_v18 }
  0x18   :  { %231 = vmatpush.bf16.msrb.mxu0 %v317_v19 }
  0x90   :  { %v87_v8 = vpop.f32.mrf.mxu0 }
  0x91   :  { %v88_v9 = vadd.f32 %v325_v7, %v87_v8 }
  0x93   :  { %v91_v10 = vmax.f32 %v88_v9, 0.0 }
  0x95   :  { %v92_v11 = vpack.c.bf16 %v91_v10, %v91_v10 }
  0x97   :  { %277 = vmatmul.msk.bf16.vlgmr.msra.gmra.mxu1 %vm74_vm0, %v92_v11  ;;  %v134_v12 = vunpack.c.l.b16 %v92_v11 }
  0x98   :  { %v89_v13 = vpop.f32.mrf.mxu0 }
  0x99   :  { %v135_v14 = vpack.c.b16 %v134_v12, %v134_v12 }
  0x9b   :  { %136 = vrot.lane.b32.xlu0 %v135_v14, %s384_s17 }
  0xa3   :  { %151 = vrot.lane.b32.xlu0 %v326_v15, %s384_s17 }
 0x10d   :  { %v137_v20 = vpop.permute.xlu0 %136 }
 0x10e   :  { %286 = vmatmul.msk.bf16.vlgmr.msra.gmra.mxu2 %vm74_vm0, %v137_v20 }
 0x114   :  { %v127_v21 = vpop.f32.mrf.mxu1 }
 0x115   :  { %v128_v22 = vadd.f32 %v326_v15, %v127_v21  ;;  %v152_v26 = vpop.permute.xlu0 %151 }
 0x117   :  { %v131_v23 = vmax.f32 %v128_v22, 0.0 }
 0x119   :  { %v132_v24 = vpack.c.bf16 %v131_v23, %v131_v23 }
 0x11b   :  { %295 = vmatmul.msk.bf16.vlgmr.msra.gmra.mxu3 %vm74_vm0, %v132_v24 }
 0x11c   :  { %v129_v25 = vpop.f32.mrf.mxu1 }
 0x191   :  { %v166_v27 = vpop.f32.mrf.mxu2 }
 0x192   :  { %v167_v28 = vadd.f32 %v166_v27, %v152_v26 }
 0x194   :  { %v170_v29 = vmax.f32 %v167_v28, 0.0 }
 0x196   :  { %v171_v30 = vpack.c.bf16 %v170_v29, %v170_v29 }
 0x198   :  { %308 = vmatmul.msk.bf16.vlgmr.msrb.gmra.mxu0 %vm74_vm0, %v171_v30 }
 0x199   :  { %v168_v31 = vpop.f32.mrf.mxu2 }
 0x19e   :  { %v200_v32 = vpop.f32.mrf.mxu3 }
 0x1a6   :  { %v202_v33 = vpop.f32.mrf.mxu3 }
 0x215   :  { %v233_v34 = vpop.f32.mrf.mxu0 }
 0x216   :  { %238 = vrot.lane.b32.xlu1 %v233_v34, %s385_s3 }
 0x21d   :  { %v235_v35 = vpop.f32.mrf.mxu0 }
 0x288   :  { %v239_v37 = vpop.permute.xlu1 %238 }
 0x289   :  { %v242_v38 = vsel %vm241_vm1, %v200_v32, %v239_v37 }
 0x28a   :  { %v247_v39 = vadd.f32 %v327_v36, %v242_v38 }
 0x28c   :  { %249 = vst.msk [vmem:[%s474_s6] sm:$0xff] %vm248_vm2, %v247_v39 }
 0x28d   :  { %254 = vsyncpa [#allocation3], 1 }
 0x28e   :  { %255 = vsyncpa [#allocation5], 1 }

</bundles_post_ra>
